<compile_context>
chip_gen: v5e
topology: v5e:2x2
jax: 0.10.0
libtpu: 0.0.40
codegen_flags: <defaults>
</compile_context>

<pallas_src>
import functools
import math

import jax
import jax.numpy as jnp
from jax.experimental import pallas as pl
from jax.experimental.pallas import tpu as pltpu


# ----------------------------------------------------------------------------
# Config (the PyTorch forward references attributes not present on the given
# AdaptiveReasoningConfig; we define them synthetically and deterministically).
# ----------------------------------------------------------------------------
class SelectorConfig:
    def __init__(self):
        self.component_costs = {
            "moe": 0.2,
            "memory_layer": 0.15,
            "knowledge_reasoning": 0.2,
            "tree_reasoning": 0.25,
            "neural_symbolic": 0.3,
            "recursive_reasoning": 0.25,
            "verifiable_computation": 0.2,
        }
        self.component_importance = {
            "moe": 0.9,
            "memory_layer": 0.5,
            "knowledge_reasoning": 0.7,
            "tree_reasoning": 0.8,
            "neural_symbolic": 0.6,
            "recursive_reasoning": 0.65,
            "verifiable_computation": 0.4,
        }
        self.low_complexity_threshold = 0.3
        self.medium_complexity_threshold = 0.7
        self.min_computation_budget = 0.2
        self.max_computation_budget = 1.0


# ----------------------------------------------------------------------------
# Pallas kernel: ComplexityEstimator forward (seq-tiled mean-pool + MLP heads)
#   pooled     = mean(hidden_states, axis=1)                      [B, H]
#   complexity = sigmoid(L3(gelu(L2(gelu(L1(pooled))))))          [B, 1]
#   features   = F2(gelu(F1(pooled)))                             [B, 5]
#   mean_comp  = mean(complexity)                                 [1, 1]
# ----------------------------------------------------------------------------
def _gelu_exact(x):
    return 0.5 * x * (1.0 + jax.lax.erf(x * (1.0 / math.sqrt(2.0))))


def _complexity_estimator_kernel(
    h_ref,
    w1_ref, b1_ref,
    w2_ref, b2_ref,
    w3_ref, b3_ref,
    wf1_ref, bf1_ref,
    wf2_ref, bf2_ref,
    comp_ref, feat_ref, mean_ref,
    sum_ref,                     # VMEM (B, H) f32 running-sum accumulator
    *, seq_len, seq_tile,
):
    pid = pl.program_id(0)
    nsteps = pl.num_programs(0)

    @pl.when(pid == 0)
    def _():
        sum_ref[...] = jnp.zeros_like(sum_ref)

    # Streamed pooling: per-tile SUM (scale by 1/S once at the end).
    h = h_ref[...].astype(jnp.float32)                      # [B, TS, H]
    if seq_len % seq_tile != 0:
        # Mask padding rows in the (possibly partial) last tile.
        row = jax.lax.broadcasted_iota(jnp.int32, (1, seq_tile, 1), 1) + pid * seq_tile
        h = jnp.where(row < seq_len, h, 0.0)
    sum_ref[...] += jnp.sum(h, axis=1)                      # [B, H]

    @pl.when(pid == nsteps - 1)
    def _():
        pooled = sum_ref[...] * (1.0 / float(seq_len))      # mean over seq, f32
        wdt = w1_ref.dtype                                  # f32 or bf16 weights

        # complexity_net: H -> H/2 -> H/4 -> 1, GELU between, Sigmoid at end
        x = jnp.dot(pooled.astype(wdt), w1_ref[...],
                    preferred_element_type=jnp.float32) + b1_ref[...]
        x = _gelu_exact(x)
        x = jnp.dot(x.astype(wdt), w2_ref[...],
                    preferred_element_type=jnp.float32) + b2_ref[...]
        x = _gelu_exact(x)
        x = jnp.dot(x.astype(wdt), w3_ref[...],
                    preferred_element_type=jnp.float32) + b3_ref[...]
        comp = jax.nn.sigmoid(x)                            # [B, 1] f32
        comp_ref[...] = comp.astype(comp_ref.dtype)

        # complexity_features: H -> H -> 5, GELU between
        f = jnp.dot(pooled.astype(wdt), wf1_ref[...],
                    preferred_element_type=jnp.float32) + bf1_ref[...]
        f = _gelu_exact(f)
        f = jnp.dot(f.astype(wdt), wf2_ref[...],
                    preferred_element_type=jnp.float32) + bf2_ref[...]
        feat_ref[...] = f.astype(feat_ref.dtype)

        # Host-needed scalar (== complexity.mean()) produced in-kernel so the
        # host does a single device->host pull of one value.
        mean_ref[...] = jnp.mean(comp, axis=0, keepdims=True)


def complexity_estimator_pallas(hidden_states, params, *, seq_tile=None,
                                weight_dtype=None):
    B, S, H = hidden_states.shape

    # Sequence tile: full S for small inputs, else a multiple of 8 (512).
    if seq_tile is None:
        seq_tile = S if S <= 512 else 512
    num_tiles = pl.cdiv(S, seq_tile)

    # bf16 weights for large H (v7x VMEM / HBM-BW); exact f32 at demo sizes.
    if weight_dtype is None:
        weight_dtype = jnp.bfloat16 if H >= 1024 else jnp.float32

    weights = (
        params["w1"].astype(weight_dtype), params["b1"].astype(jnp.float32),
        params["w2"].astype(weight_dtype), params["b2"].astype(jnp.float32),
        params["w3"].astype(weight_dtype), params["b3"].astype(jnp.float32),
        params["wf1"].astype(weight_dtype), params["bf1"].astype(jnp.float32),
        params["wf2"].astype(weight_dtype), params["bf2"].astype(jnp.float32),
    )
    # TODO(synk): for very large H on v7x, additionally column-tile wf1/w1
    # (second grid axis marked "parallel") so the two TCs split the weight stream.

    h_spec = pl.BlockSpec((B, seq_tile, H), lambda s: (0, s, 0))

    def _const2d(arr):
        return pl.BlockSpec(arr.shape, lambda s: (0, 0))

    in_specs = [h_spec] + [_const2d(a) for a in weights]
    out_specs = (
        pl.BlockSpec((B, 1), lambda s: (0, 0)),
        pl.BlockSpec((B, 5), lambda s: (0, 0)),
        pl.BlockSpec((1, 1), lambda s: (0, 0)),
    )

    # VMEM budget: double-buffered seq tile + resident weights + accumulator.
    h_tile_bytes = B * seq_tile * H * hidden_states.dtype.itemsize
    w_bytes = sum(int(a.size) * a.dtype.itemsize for a in weights)
    scratch_bytes = B * H * 4
    out_bytes = (B * 1 + B * 5 + 1) * 4
    needed = 2 * h_tile_bytes + w_bytes + scratch_bytes + out_bytes + (4 << 20)
    vmem_limit = int(max(needed, 32 << 20))

    kernel = functools.partial(
        _complexity_estimator_kernel, seq_len=S, seq_tile=seq_tile)

    comp, feat, mean_comp = pl.pallas_call(
        kernel,
        grid=(num_tiles,),
        in_specs=in_specs,
        out_specs=out_specs,
        out_shape=(
            jax.ShapeDtypeStruct((B, 1), jnp.float32),
            jax.ShapeDtypeStruct((B, 5), jnp.float32),
            jax.ShapeDtypeStruct((1, 1), jnp.float32),
        ),
        scratch_shapes=[pltpu.VMEM((B, H), jnp.float32)],
        compiler_params=pltpu.CompilerParams(
            dimension_semantics=("arbitrary",),
            vmem_limit_bytes=vmem_limit,
        ),
    )(hidden_states, *weights)
    return comp, feat, mean_comp


# ----------------------------------------------------------------------------
# Parameter init (deterministic, synthetic — shapes follow the module __init__)
# ----------------------------------------------------------------------------
def init_params(key, hidden_size, num_components):
    H = hidden_size
    ks = jax.random.split(key, 8)

    def lin(k, fan_in, fan_out):
        # Kaiming-uniform-ish, deterministic; stored as [in, out]
        bound = 1.0 / math.sqrt(fan_in)
        w = jax.random.uniform(k, (fan_in, fan_out), jnp.float32, -bound, bound)
        b = jnp.zeros((1, fan_out), jnp.float32)
        return w, b

    p = {}
    p["w1"], p["b1"] = lin(ks[0], H, H // 2)
    p["w2"], p["b2"] = lin(ks[1], H // 2, H // 4)
    p["w3"], p["b3"] = lin(ks[2], H // 4, 1)
    p["wf1"], p["bf1"] = lin(ks[3], H, H)
    p["wf2"], p["bf2"] = lin(ks[4], H, 5)
    # selection_net (Linear(6,64) -> GELU -> Linear(64, num_components)):
    # defined in __init__ but never used in the PyTorch forward; kept for parity.
    p["sel_w1"], p["sel_b1"] = lin(ks[5], 6, 64)
    p["sel_w2"], p["sel_b2"] = lin(ks[6], 64, num_components)
    return p


# ----------------------------------------------------------------------------
# ComponentSelector forward (Python glue around the Pallas hot path)
# ----------------------------------------------------------------------------
def _select_simple(config, available_compute):
    components = {name: False for name in config.component_costs}
    components["moe"] = True
    available_compute -= config.component_costs.get("moe", 0)
    if available_compute >= config.component_costs.get("memory_layer", 0):
        components["memory_layer"] = True
        available_compute -= config.component_costs.get("memory_layer", 0)
    if available_compute >= config.component_costs.get("knowledge_reasoning", 0):
        components["knowledge_reasoning"] = True
        available_compute -= config.component_costs.get("knowledge_reasoning", 0)
    return components


def _select_moderate(config, available_compute):
    components = {name: False for name in config.component_costs}
    sorted_components = sorted(
        config.component_importance.items(), key=lambda x: x[1], reverse=True
    )
    for name, _ in sorted_components:
        if available_compute >= config.component_costs.get(name, 0):
            components[name] = True
            available_compute -= config.component_costs.get(name, 0)
        else:
            components[name] = False
    return components


def _select_complex(config, available_compute):
    components = {name: False for name in config.component_costs}
    priority = [
        "tree_reasoning", "neural_symbolic", "recursive_reasoning", "moe",
        "knowledge_reasoning", "verifiable_computation", "memory_layer",
    ]
    for name in priority:
        if available_compute >= config.component_costs.get(name, 0):
            components[name] = True
            available_compute -= config.component_costs.get(name, 0)
        else:
            components[name] = False
    return components


def component_selector_forward(config, params, hidden_states, available_compute=1.0):
    complexity_b1, features, mean_comp = complexity_estimator_pallas(
        hidden_states, params)
    # Single host sync: the scalar was reduced in-kernel (== complexity.mean().item()).
    complexity = float(mean_comp[0, 0])
    adjusted_compute = min(
        config.max_computation_budget,
        max(config.min_computation_budget, available_compute * (0.5 + 0.5 * complexity)),
    )
    if complexity < config.low_complexity_threshold:
        comps = _select_simple(config, adjusted_compute)
    elif complexity < config.medium_complexity_threshold:
        comps = _select_moderate(config, adjusted_compute)
    else:
        comps = _select_complex(config, adjusted_compute)
    return comps, complexity_b1, features


if __name__ == "__main__":
    B, S, H = 2, 8, 32
    config = SelectorConfig()

    key = jax.random.PRNGKey(0)
    k_x, k_p = jax.random.split(key)
    hidden_states = jax.random.normal(k_x, (B, S, H), dtype=jnp.float32)
    params = init_params(k_p, H, len(config.component_costs))

    components, complexity, features = component_selector_forward(
        config, params, hidden_states, available_compute=1.0
    )
    jax.block_until_ready((complexity, features))

    assert complexity.shape == (B, 1)
    assert features.shape == (B, 5)
    assert set(components.keys()) == set(config.component_costs.keys())
    print("KERNEL_OK")
</pallas_src>

<mosaic_0001>
module attributes {stable_mosaic.version = 11 : i64} {
  func.func @_complexity_estimator_kernel(%arg0: i32, %arg1: memref<2x8x32xf32, #tpu.memory_space<vmem>>, %arg2: memref<32x16xf32, #tpu.memory_space<vmem>>, %arg3: memref<1x16xf32, #tpu.memory_space<vmem>>, %arg4: memref<16x8xf32, #tpu.memory_space<vmem>>, %arg5: memref<1x8xf32, #tpu.memory_space<vmem>>, %arg6: memref<8x1xf32, #tpu.memory_space<vmem>>, %arg7: memref<1x1xf32, #tpu.memory_space<vmem>>, %arg8: memref<32x32xf32, #tpu.memory_space<vmem>>, %arg9: memref<1x32xf32, #tpu.memory_space<vmem>>, %arg10: memref<32x5xf32, #tpu.memory_space<vmem>>, %arg11: memref<1x5xf32, #tpu.memory_space<vmem>>, %arg12: memref<2x1xf32, #tpu.memory_space<vmem>>, %arg13: memref<2x5xf32, #tpu.memory_space<vmem>>, %arg14: memref<1x1xf32, #tpu.memory_space<vmem>>, %arg15: memref<2x32xf32, #tpu.memory_space<vmem>>) attributes {dimension_semantics = [#tpu.dimension_semantics<arbitrary>], iteration_bounds = array<i64: 1>, scalar_prefetch = 0 : i64, scratch_operands = 1 : i64, tpu.core_type = #tpu.core_type<tc>, window_params = [{transform_indices = @transform_0, window_bounds = array<i64: 2, 8, 32>}, {pipeline_mode = #tpu.pipeline_mode<synchronous>, transform_indices = @transform_1, window_bounds = array<i64: 32, 16>}, {pipeline_mode = #tpu.pipeline_mode<synchronous>, transform_indices = @transform_2, window_bounds = array<i64: 1, 16>}, {pipeline_mode = #tpu.pipeline_mode<synchronous>, transform_indices = @transform_3, window_bounds = array<i64: 16, 8>}, {pipeline_mode = #tpu.pipeline_mode<synchronous>, transform_indices = @transform_4, window_bounds = array<i64: 1, 8>}, {pipeline_mode = #tpu.pipeline_mode<synchronous>, transform_indices = @transform_5, window_bounds = array<i64: 8, 1>}, {pipeline_mode = #tpu.pipeline_mode<synchronous>, transform_indices = @transform_6, window_bounds = array<i64: 1, 1>}, {pipeline_mode = #tpu.pipeline_mode<synchronous>, transform_indices = @transform_7, window_bounds = array<i64: 32, 32>}, {pipeline_mode = #tpu.pipeline_mode<synchronous>, transform_indices = @transform_8, window_bounds = array<i64: 1, 32>}, {pipeline_mode = #tpu.pipeline_mode<synchronous>, transform_indices = @transform_9, window_bounds = array<i64: 32, 5>}, {pipeline_mode = #tpu.pipeline_mode<synchronous>, transform_indices = @transform_10, window_bounds = array<i64: 1, 5>}, {pipeline_mode = #tpu.pipeline_mode<synchronous>, transform_indices = @transform_11, window_bounds = array<i64: 2, 1>}, {pipeline_mode = #tpu.pipeline_mode<synchronous>, transform_indices = @transform_12, window_bounds = array<i64: 2, 5>}, {pipeline_mode = #tpu.pipeline_mode<synchronous>, transform_indices = @transform_13, window_bounds = array<i64: 1, 1>}]} {
    %c0_i32 = arith.constant 0 : i32
    %0 = arith.cmpi eq, %arg0, %c0_i32 : i32
    %1 = arith.extui %0 : i1 to i32
    %c0_i32_0 = arith.constant 0 : i32
    %2 = arith.cmpi ne, %1, %c0_i32_0 : i32
    scf.if %2 {
      %cst_9 = arith.constant 0.000000e+00 : f32
      %11 = vector.broadcast %cst_9 : f32 to vector<2x32xf32>
      %c0_10 = arith.constant 0 : index
      %c0_11 = arith.constant 0 : index
      %12 = vector.load %arg15[%c0_10, %c0_11] : memref<2x32xf32, #tpu.memory_space<vmem>>, vector<2x32xf32>
      tpu.vector_store %arg15[%c0_10, %c0_11], %11 {strides = array<i32>} : memref<2x32xf32, #tpu.memory_space<vmem>>, vector<2x32xf32>,
    } else {
    }
    %c0 = arith.constant 0 : index
    %c0_1 = arith.constant 0 : index
    %c0_2 = arith.constant 0 : index
    %3 = vector.load %arg1[%c0, %c0_1, %c0_2] : memref<2x8x32xf32, #tpu.memory_space<vmem>>, vector<2x8x32xf32>
    %c0_3 = arith.constant 0 : index
    %c0_4 = arith.constant 0 : index
    %4 = vector.load %arg15[%c0_3, %c0_4] : memref<2x32xf32, #tpu.memory_space<vmem>>, vector<2x32xf32>
    %cst = arith.constant dense<0.000000e+00> : vector<2x32xf32>
    %5 = vector.multi_reduction <add>, %3, %cst [1] : vector<2x8x32xf32> to vector<2x32xf32>
    %6 = arith.addf %4, %5 : vector<2x32xf32>
    %c0_5 = arith.constant 0 : index
    %c0_6 = arith.constant 0 : index
    %7 = vector.load %arg15[%c0_5, %c0_6] : memref<2x32xf32, #tpu.memory_space<vmem>>, vector<2x32xf32>
    tpu.vector_store %arg15[%c0_5, %c0_6], %6 {strides = array<i32>} : memref<2x32xf32, #tpu.memory_space<vmem>>, vector<2x32xf32>,
    %c0_i32_7 = arith.constant 0 : i32
    %8 = arith.cmpi eq, %arg0, %c0_i32_7 : i32
    %9 = arith.extui %8 : i1 to i32
    %c0_i32_8 = arith.constant 0 : i32
    %10 = arith.cmpi ne, %9, %c0_i32_8 : i32
    scf.if %10 {
      %c0_9 = arith.constant 0 : index
      %c0_10 = arith.constant 0 : index
      %11 = vector.load %arg15[%c0_9, %c0_10] : memref<2x32xf32, #tpu.memory_space<vmem>>, vector<2x32xf32>
      %cst_11 = arith.constant 1.250000e-01 : f32
      %12 = vector.broadcast %cst_11 : f32 to vector<2x32xf32>
      %13 = arith.mulf %11, %12 : vector<2x32xf32>
      %c0_12 = arith.constant 0 : index
      %c0_13 = arith.constant 0 : index
      %14 = vector.load %arg2[%c0_12, %c0_13] : memref<32x16xf32, #tpu.memory_space<vmem>>, vector<32x16xf32>
      %cst_14 = arith.constant dense<0.000000e+00> : vector<2x16xf32>
      %15 = tpu.matmul %13, %14, %cst_14 {dimension_numbers = #tpu.dot_dimension_numbers<[1], [0], [0], [1], [0, 0, 1, 1], [], []>} : vector<2x32xf32>, vector<32x16xf32>, vector<2x16xf32> -> vector<2x16xf32>
      %c0_15 = arith.constant 0 : index
      %c0_16 = arith.constant 0 : index
      %16 = vector.load %arg3[%c0_15, %c0_16] : memref<1x16xf32, #tpu.memory_space<vmem>>, vector<1x16xf32>
      %17 = vector.broadcast %16 : vector<1x16xf32> to vector<2x16xf32>
      %18 = arith.addf %15, %17 : vector<2x16xf32>
      %cst_17 = arith.constant 5.000000e-01 : f32
      %19 = vector.broadcast %cst_17 : f32 to vector<2x16xf32>
      %20 = arith.mulf %19, %18 : vector<2x16xf32>
      %cst_18 = arith.constant 0.707106769 : f32
      %21 = vector.broadcast %cst_18 : f32 to vector<2x16xf32>
      %22 = arith.mulf %18, %21 : vector<2x16xf32>
      %23 = math.erf %22 : vector<2x16xf32>
      %cst_19 = arith.constant 1.000000e+00 : f32
      %24 = vector.broadcast %cst_19 : f32 to vector<2x16xf32>
      %25 = arith.addf %24, %23 : vector<2x16xf32>
      %26 = arith.mulf %20, %25 : vector<2x16xf32>
      %c0_20 = arith.constant 0 : index
      %c0_21 = arith.constant 0 : index
      %27 = vector.load %arg4[%c0_20, %c0_21] : memref<16x8xf32, #tpu.memory_space<vmem>>, vector<16x8xf32>
      %cst_22 = arith.constant dense<0.000000e+00> : vector<2x8xf32>
      %28 = tpu.matmul %26, %27, %cst_22 {dimension_numbers = #tpu.dot_dimension_numbers<[1], [0], [0], [1], [0, 0, 1, 1], [], []>} : vector<2x16xf32>, vector<16x8xf32>, vector<2x8xf32> -> vector<2x8xf32>
      %c0_23 = arith.constant 0 : index
      %c0_24 = arith.constant 0 : index
      %29 = vector.load %arg5[%c0_23, %c0_24] : memref<1x8xf32, #tpu.memory_space<vmem>>, vector<1x8xf32>
      %30 = vector.broadcast %29 : vector<1x8xf32> to vector<2x8xf32>
      %31 = arith.addf %28, %30 : vector<2x8xf32>
      %cst_25 = arith.constant 5.000000e-01 : f32
      %32 = vector.broadcast %cst_25 : f32 to vector<2x8xf32>
      %33 = arith.mulf %32, %31 : vector<2x8xf32>
      %cst_26 = arith.constant 0.707106769 : f32
      %34 = vector.broadcast %cst_26 : f32 to vector<2x8xf32>
      %35 = arith.mulf %31, %34 : vector<2x8xf32>
      %36 = math.erf %35 : vector<2x8xf32>
      %cst_27 = arith.constant 1.000000e+00 : f32
      %37 = vector.broadcast %cst_27 : f32 to vector<2x8xf32>
      %38 = arith.addf %37, %36 : vector<2x8xf32>
      %39 = arith.mulf %33, %38 : vector<2x8xf32>
      %c0_28 = arith.constant 0 : index
      %c0_29 = arith.constant 0 : index
      %40 = vector.load %arg6[%c0_28, %c0_29] : memref<8x1xf32, #tpu.memory_space<vmem>>, vector<8x1xf32>
      %cst_30 = arith.constant dense<0.000000e+00> : vector<2x1xf32>
      %41 = tpu.matmul %39, %40, %cst_30 {dimension_numbers = #tpu.dot_dimension_numbers<[1], [0], [0], [1], [0, 0, 1, 1], [], []>} : vector<2x8xf32>, vector<8x1xf32>, vector<2x1xf32> -> vector<2x1xf32>
      %c0_31 = arith.constant 0 : index
      %c0_32 = arith.constant 0 : index
      %42 = vector.load %arg7[%c0_31, %c0_32] : memref<1x1xf32, #tpu.memory_space<vmem>>, vector<1x1xf32>
      %43 = vector.broadcast %42 : vector<1x1xf32> to vector<2x1xf32>
      %44 = arith.addf %41, %43 : vector<2x1xf32>
      %45 = arith.negf %44 : vector<2x1xf32>
      %46 = math.exp %45 : vector<2x1xf32>
      %cst_33 = arith.constant 1.000000e+00 : f32
      %47 = vector.broadcast %cst_33 : f32 to vector<2x1xf32>
      %48 = arith.addf %47, %46 : vector<2x1xf32>
      %49 = arith.divf %47, %48 : vector<2x1xf32>
      %c0_34 = arith.constant 0 : index
      %c0_35 = arith.constant 0 : index
      %50 = vector.load %arg12[%c0_34, %c0_35] : memref<2x1xf32, #tpu.memory_space<vmem>>, vector<2x1xf32>
      tpu.vector_store %arg12[%c0_34, %c0_35], %49 {strides = array<i32>} : memref<2x1xf32, #tpu.memory_space<vmem>>, vector<2x1xf32>,
      %c0_36 = arith.constant 0 : index
      %c0_37 = arith.constant 0 : index
      %51 = vector.load %arg8[%c0_36, %c0_37] : memref<32x32xf32, #tpu.memory_space<vmem>>, vector<32x32xf32>
      %cst_38 = arith.constant dense<0.000000e+00> : vector<2x32xf32>
      %52 = tpu.matmul %13, %51, %cst_38 {dimension_numbers = #tpu.dot_dimension_numbers<[1], [0], [0], [1], [0, 0, 1, 1], [], []>} : vector<2x32xf32>, vector<32x32xf32>, vector<2x32xf32> -> vector<2x32xf32>
      %c0_39 = arith.constant 0 : index
      %c0_40 = arith.constant 0 : index
      %53 = vector.load %arg9[%c0_39, %c0_40] : memref<1x32xf32, #tpu.memory_space<vmem>>, vector<1x32xf32>
      %54 = vector.broadcast %53 : vector<1x32xf32> to vector<2x32xf32>
      %55 = arith.addf %52, %54 : vector<2x32xf32>
      %cst_41 = arith.constant 5.000000e-01 : f32
      %56 = vector.broadcast %cst_41 : f32 to vector<2x32xf32>
      %57 = arith.mulf %56, %55 : vector<2x32xf32>
      %cst_42 = arith.constant 0.707106769 : f32
      %58 = vector.broadcast %cst_42 : f32 to vector<2x32xf32>
      %59 = arith.mulf %55, %58 : vector<2x32xf32>
      %60 = math.erf %59 : vector<2x32xf32>
      %cst_43 = arith.constant 1.000000e+00 : f32
      %61 = vector.broadcast %cst_43 : f32 to vector<2x32xf32>
      %62 = arith.addf %61, %60 : vector<2x32xf32>
      %63 = arith.mulf %57, %62 : vector<2x32xf32>
      %c0_44 = arith.constant 0 : index
      %c0_45 = arith.constant 0 : index
      %64 = vector.load %arg10[%c0_44, %c0_45] : memref<32x5xf32, #tpu.memory_space<vmem>>, vector<32x5xf32>
      %cst_46 = arith.constant dense<0.000000e+00> : vector<2x5xf32>
      %65 = tpu.matmul %63, %64, %cst_46 {dimension_numbers = #tpu.dot_dimension_numbers<[1], [0], [0], [1], [0, 0, 1, 1], [], []>} : vector<2x32xf32>, vector<32x5xf32>, vector<2x5xf32> -> vector<2x5xf32>
      %c0_47 = arith.constant 0 : index
      %c0_48 = arith.constant 0 : index
      %66 = vector.load %arg11[%c0_47, %c0_48] : memref<1x5xf32, #tpu.memory_space<vmem>>, vector<1x5xf32>
      %67 = vector.broadcast %66 : vector<1x5xf32> to vector<2x5xf32>
      %68 = arith.addf %65, %67 : vector<2x5xf32>
      %c0_49 = arith.constant 0 : index
      %c0_50 = arith.constant 0 : index
      %69 = vector.load %arg13[%c0_49, %c0_50] : memref<2x5xf32, #tpu.memory_space<vmem>>, vector<2x5xf32>
      tpu.vector_store %arg13[%c0_49, %c0_50], %68 {strides = array<i32>} : memref<2x5xf32, #tpu.memory_space<vmem>>, vector<2x5xf32>,
      %cst_51 = arith.constant dense<0.000000e+00> : vector<1xf32>
      %70 = vector.multi_reduction <add>, %49, %cst_51 [0] : vector<2x1xf32> to vector<1xf32>
      %71 = vector.shape_cast %70 : vector<1xf32> to vector<1x1xf32>
      %cst_52 = arith.constant 2.000000e+00 : f32
      %72 = vector.broadcast %cst_52 : f32 to vector<1x1xf32>
      %73 = arith.divf %71, %72 : vector<1x1xf32>
      %c0_53 = arith.constant 0 : index
      %c0_54 = arith.constant 0 : index
      %74 = vector.load %arg14[%c0_53, %c0_54] : memref<1x1xf32, #tpu.memory_space<vmem>>, vector<1x1xf32>
      tpu.vector_store %arg14[%c0_53, %c0_54], %73 {strides = array<i32>} : memref<1x1xf32, #tpu.memory_space<vmem>>, vector<1x1xf32>,
    } else {
    }
    return
  }
  func.func @transform_0(%arg0: i32) -> (i32, i32, i32) {
    %c0_i32 = arith.constant 0 : i32
    %c0_i32_0 = arith.constant 0 : i32
    %c0_i32_1 = arith.constant 0 : i32
    return %c0_i32, %arg0, %c0_i32_0 : i32, i32, i32
  }
  func.func @transform_1(%arg0: i32) -> (i32, i32) {
    %c0_i32 = arith.constant 0 : i32
    %c0_i32_0 = arith.constant 0 : i32
    %c0_i32_1 = arith.constant 0 : i32
    return %c0_i32, %c0_i32_0 : i32, i32
  }
  func.func @transform_2(%arg0: i32) -> (i32, i32) {
    %c0_i32 = arith.constant 0 : i32
    %c0_i32_0 = arith.constant 0 : i32
    %c0_i32_1 = arith.constant 0 : i32
    return %c0_i32, %c0_i32_0 : i32, i32
  }
  func.func @transform_3(%arg0: i32) -> (i32, i32) {
    %c0_i32 = arith.constant 0 : i32
    %c0_i32_0 = arith.constant 0 : i32
    %c0_i32_1 = arith.constant 0 : i32
    return %c0_i32, %c0_i32_0 : i32, i32
  }
  func.func @transform_4(%arg0: i32) -> (i32, i32) {
    %c0_i32 = arith.constant 0 : i32
    %c0_i32_0 = arith.constant 0 : i32
    %c0_i32_1 = arith.constant 0 : i32
    return %c0_i32, %c0_i32_0 : i32, i32
  }
  func.func @transform_5(%arg0: i32) -> (i32, i32) {
    %c0_i32 = arith.constant 0 : i32
    %c0_i32_0 = arith.constant 0 : i32
    %c0_i32_1 = arith.constant 0 : i32
    return %c0_i32, %c0_i32_0 : i32, i32
  }
  func.func @transform_6(%arg0: i32) -> (i32, i32) {
    %c0_i32 = arith.constant 0 : i32
    %c0_i32_0 = arith.constant 0 : i32
    %c0_i32_1 = arith.constant 0 : i32
    return %c0_i32, %c0_i32_0 : i32, i32
  }
  func.func @transform_7(%arg0: i32) -> (i32, i32) {
    %c0_i32 = arith.constant 0 : i32
    %c0_i32_0 = arith.constant 0 : i32
    %c0_i32_1 = arith.constant 0 : i32
    return %c0_i32, %c0_i32_0 : i32, i32
  }
  func.func @transform_8(%arg0: i32) -> (i32, i32) {
    %c0_i32 = arith.constant 0 : i32
    %c0_i32_0 = arith.constant 0 : i32
    %c0_i32_1 = arith.constant 0 : i32
    return %c0_i32, %c0_i32_0 : i32, i32
  }
  func.func @transform_9(%arg0: i32) -> (i32, i32) {
    %c0_i32 = arith.constant 0 : i32
    %c0_i32_0 = arith.constant 0 : i32
    %c0_i32_1 = arith.constant 0 : i32
    return %c0_i32, %c0_i32_0 : i32, i32
  }
  func.func @transform_10(%arg0: i32) -> (i32, i32) {
    %c0_i32 = arith.constant 0 : i32
    %c0_i32_0 = arith.constant 0 : i32
    %c0_i32_1 = arith.constant 0 : i32
    return %c0_i32, %c0_i32_0 : i32, i32
  }
  func.func @transform_11(%arg0: i32) -> (i32, i32) {
    %c0_i32 = arith.constant 0 : i32
    %c0_i32_0 = arith.constant 0 : i32
    %c0_i32_1 = arith.constant 0 : i32
    return %c0_i32, %c0_i32_0 : i32, i32
  }
  func.func @transform_12(%arg0: i32) -> (i32, i32) {
    %c0_i32 = arith.constant 0 : i32
    %c0_i32_0 = arith.constant 0 : i32
    %c0_i32_1 = arith.constant 0 : i32
    return %c0_i32, %c0_i32_0 : i32, i32
  }
  func.func @transform_13(%arg0: i32) -> (i32, i32) {
    %c0_i32 = arith.constant 0 : i32
    %c0_i32_0 = arith.constant 0 : i32
    %c0_i32_1 = arith.constant 0 : i32
    return %c0_i32, %c0_i32_0 : i32, i32
  }
}

</mosaic_0001>

<bundles_post_ra>
// kernel: tpu_custom_call.1
= control target key start
LH: loop header
LB: loop body
LE: loop exit
PB: predicated region body
PF: predicated region fallthrough
CT: control target
= control target key end

     0   :  { %s701_s0 = inlined_call_operand.vmem [shape: f32[2,8,32], index: 0, kind: input, shape index: {}]   ;;  %s702_s1 = inlined_call_operand.vmem [shape: f32[32,16], index: 1, kind: input, shape index: {}]   ;;  %s703_s2 = inlined_call_operand.vmem [shape: f32[1,16], index: 2, kind: input, shape index: {}]   ;;  %s704_s3 = inlined_call_operand.vmem [shape: f32[16,8], index: 3, kind: input, shape index: {}]   ;;  %s705_s4 = inlined_call_operand.vmem [shape: f32[1,8], index: 4, kind: input, shape index: {}]   ;;  %s706_s5 = inlined_call_operand.vmem [shape: f32[8,1], index: 5, kind: input, shape index: {}]   ;;  %s707_s6 = inlined_call_operand.<no memory space> [shape: f32[1,1], index: 6, kind: input, shape index: {}]   ;;  %s708_s7 = inlined_call_operand.vmem [shape: f32[32,32], index: 7, kind: input, shape index: {}]   ;;  %s709_s8 = inlined_call_operand.vmem [shape: f32[1,32], index: 8, kind: input, shape index: {}]   ;;  %s710_s9 = inlined_call_operand.vmem [shape: f32[32,5], index: 9, kind: input, shape index: {}]   ;;  %s711_s10 = inlined_call_operand.vmem [shape: f32[1,5], index: 10, kind: input, shape index: {}]   ;;  %s712_s11 = inlined_call_operand.vmem [shape: f32[2,1], index: 11, kind: output, shape index: {0}]   ;;  %s713_s12 = inlined_call_operand.hbm [shape: f32[2,5], index: 12, kind: output, shape index: {1}]   ;;  %s714_s13 = inlined_call_operand.hbm [shape: f32[1,1], index: 13, kind: output, shape index: {2}]  }
   0x1   :  { %v19_v0 = vstv %s707_s6 }
   0x2   :  { %20 = vst [vmem:[#allocation3] sm:$0x1] %v19_v0 }
   0x3   :  { %21 = vsyncpa [#allocation5], 0  ;;  %v85_v1 = vld [vmem:[%s702_s1 + $0x18] sm:$0xff]  ;;  %v84_v2 = vld [vmem:[%s702_s1 + $0x10] sm:$0xff]  ;;  %vm49_vm0 = vcmask 254976   ;;  %vm54_vm1 = vcmask 261120  }
   0x4   :  { %105 = vmatpush.msra.mxu0 %v85_v1  ;;  %v521_v3 = vmov 0.0   ;;  %v51_v4 = vld [vmem:[%s701_s0] sm:$0xff]  ;;  %v52_v5 = vld [vmem:[%s701_s0 + $0x8] sm:$0xff] }
   0x5   :  { %50 = vst.msk [vmem:[#allocation2] sm:$0x3] %vm49_vm0, %v521_v3  ;;  %v83_v6 = vld [vmem:[%s702_s1 + $0x8] sm:$0xff]  ;;  %v82_v7 = vld [vmem:[%s702_s1] sm:$0xff]  ;;  %v55_v8 = vsel %vm54_vm1, %v51_v4, 0.0  ;;  %v62_v9 = vsel %vm54_vm1, %v52_v5, 0.0 }
   0x6   :  { %106 = vmatpush.msra.mxu0 %v84_v2  ;;  %v56_v10 = vrot.slane %v55_v8, 4  ;;  %v63_v11 = vrot.slane %v62_v9, 4 }
   0x7   :  { %22 = vsyncpa [#allocation7], 0  ;;  %vm71_vm2 = vcmask 1041409   ;;  %v452_v27 = vld [vmem:[%s703_s2] ss:$0 sm:$0xff]  ;;  %v284_v32 = vld [vmem:[%s708_s7 + $0x18] sm:$0xff] }
   0x8   :  { %107 = vmatpush.msra.mxu0 %v83_v6  ;;  %v57_v12 = vadd.f32 %v56_v10, %v55_v8  ;;  %v64_v13 = vadd.f32 %v63_v11, %v62_v9  ;;  %301 = vmatpush.msra.mxu3 %v284_v32  ;;  %v283_v34 = vld [vmem:[%s708_s7 + $0x10] sm:$0xff]  ;;  %v282_v37 = vld [vmem:[%s708_s7 + $0x8] sm:$0xff]  ;;  %v281_v40 = vld [vmem:[%s708_s7] sm:$0xff]  ;;  %vm163_vm7 = vcmask 130048   ;;  %s522_s22 = smov [#allocation4]   ;;  %s412_s26 = sshll.u32 %s713_s12, 4  ;;  %s413_s26 = int_to_ptr.hbm [resolvable:$true] %s412_s26 }
   0x9   :  { %v158_v43 = vld [vmem:[%s704_s3 + $0x8] sm:$0xff]  ;;  %v157_v44 = vld [vmem:[%s704_s3] sm:$0xff]  ;;  %s410_s23 = sshll.u32 %s522_s22, 4  ;;  %s524_s2 = smov [#allocation6]   ;;  %s411_s23 = int_to_ptr.vmem [resolvable:$true] %s410_s23 }
   0xa   :  { %108 = vmatpush.msra.mxu0 %v82_v7  ;;  %v58_v14 = vrot.slane %v57_v12, 2  ;;  %v65_v15 = vrot.slane %v64_v13, 2  ;;  %302 = vmatpush.msra.mxu3 %v283_v34  ;;  %v453_v11 = vld [vmem:[%s709_s8] ss:$0 sm:$0xff]  ;;  %s421_s27 = sshll.u32 %s524_s2, 4  ;;  %s423_s30 = sshll.u32 %s714_s13, 4  ;;  %s422_s27 = int_to_ptr.vmem [resolvable:$true] %s421_s27  ;;  %s424_s30 = int_to_ptr.hbm [resolvable:$true] %s423_s30 }
   0xb   :  { %181 = vmatpush.msra.mxu1 %v158_v43 }
   0xc   :  { %v59_v16 = vadd.f32 %v58_v14, %v57_v12  ;;  %v66_v17 = vadd.f32 %v65_v15, %v64_v13  ;;  %v53_v20 = vld [vmem:[#allocation2] sm:$0x3]  ;;  %303 = vmatpush.msra.mxu3 %v282_v37 }
   0xd   :  { %182 = vmatpush.msra.mxu1 %v157_v44 }
   0xe   :  { %v60_v18 = vrot.slane %v59_v16, 1  ;;  %v67_v19 = vrot.slane %v66_v17, 1  ;;  %304 = vmatpush.msra.mxu3 %v281_v40 }
  0x10   :  { %v61_v21 = vadd.f32 %v60_v18, %v59_v16  ;;  %v68_v22 = vadd.f32 %v67_v19, %v66_v17 }
  0x12   :  { %v72_v23 = vsel %vm71_vm2, %v68_v22, %v61_v21  ;;  %vm384_vm2 = vcmask 33792  }
  0x13   :  { %v74_v24 = vadd.f32 %v72_v23, %v53_v20  ;;  %v454_v23 = vld [vmem:[%s705_s4] ss:$0 sm:$0xff] }
  0x15   :  { %76 = vst.msk [vmem:[#allocation2] sm:$0x3] %vm49_vm0, %v74_v24  ;;  %vm236_vm0 = vcmask 64512  }
  0x1c   :  { %v80_v25 = vld [vmem:[#allocation2] sm:$0x3] }
  0x1d   :  { %v81_v26 = vmul.f32 0.125, %v80_v25 }
  0x1f   :  { %439 = vmatmul.msk.f32.vlgmr.msra.gmra.mxu0 %vm54_vm1, %v81_v26  ;;  %445 = vmatmul.msk.f32.vlgmr.msra.gmra.mxu3 %vm54_vm1, %v81_v26 }
  0x9c   :  { %v110_v28 = vpop.f32.mrf.mxu0 }
  0x9d   :  { %v111_v29 = vadd.f32 %v452_v27, %v110_v28 }
  0x9f   :  { %v114_v30 = vmul.f32 0.70710677, %v111_v29  ;;  %v113_v8 = vmul.f32 0.5, %v111_v29 }
  0xa1   :  { %v115_v31 = vmul.f32 %v114_v30, %v114_v30 }
  0xa2   :  { %v306_v12 = vpop.f32.mrf.mxu3 }
  0xa3   :  { %v116_v33 = vmin.f32 %v115_v31, 16.0  ;;  %v646_v13 = vadd.f32 %v453_v11, %v306_v12 }
  0xa5   :  { %v117_v35 = vmul.f32 2.1237322e-06, %v116_v33  ;;  %v128_v36 = vmul.f32 3.8918573e-05, %v116_v33  ;;  %v649_v14 = vmul.f32 0.70710677, %v646_v13 }
  0xa7   :  { %v118_v38 = vadd.f32 0.00028619796, %v117_v35  ;;  %v129_v39 = vadd.f32 0.001143296, %v128_v36  ;;  %v311_v15 = vmul.f32 %v649_v14, %v649_v14 }
  0xa9   :  { %v119_v41 = vmul.f32 %v118_v38, %v116_v33  ;;  %v130_v42 = vmul.f32 %v129_v39, %v116_v33  ;;  %v312_v16 = vmin.f32 %v311_v15, 16.0 }
  0xab   :  { %v131_v45 = vadd.f32 0.014752088, %v130_v42  ;;  %v120_v46 = vadd.f32 0.0036580483, %v119_v41  ;;  %v324_v17 = vmul.f32 3.8918573e-05, %v312_v16 }
  0xac   :  { %v313_v27 = vmul.f32 2.1237322e-06, %v312_v16  ;;  %v231_v42 = vld [vmem:[%s706_s5] sm:$0xff] }
  0xad   :  { %v132_v47 = vmul.f32 %v131_v45, %v116_v33  ;;  %v121_v49 = vmul.f32 %v120_v46, %v116_v33  ;;  %v325_v18 = vadd.f32 0.001143296, %v324_v17  ;;  %255 = vmatpush.msra.mxu2 %v231_v42 }
  0xae   :  { %v314_v31 = vadd.f32 0.00028619796, %v313_v27 }
  0xaf   :  { %v133_v48 = vadd.f32 0.112945676, %v132_v47  ;;  %v122_v52 = vadd.f32 0.05243302, %v121_v49  ;;  %v326_v19 = vmul.f32 %v325_v18, %v312_v16 }
  0xb0   :  { %v315_v36 = vmul.f32 %v314_v31, %v312_v16 }
  0xb1   :  { %v134_v50 = vmul.f32 %v133_v48, %v116_v33  ;;  %v123_v55 = vmul.f32 %v122_v52, %v116_v33  ;;  %v327_v20 = vadd.f32 0.014752088, %v326_v19  ;;  %v355_v52 = vld [vmem:[%s710_s9 + $0x10] sm:$0xff] }
  0xb2   :  { %v316_v43 = vadd.f32 0.0036580483, %v315_v36 }
  0xb3   :  { %v135_v51 = vadd.f32 0.4994258, %v134_v50  ;;  %v124_v56 = vadd.f32 0.18741608, %v123_v55  ;;  %v328_v21 = vmul.f32 %v327_v20, %v312_v16 }
  0xb4   :  { %v317_v47 = vmul.f32 %v316_v43, %v312_v16 }
  0xb5   :  { %v136_v53 = vmul.f32 %v135_v51, %v116_v33  ;;  %v125_v58 = vmul.f32 %v124_v56, %v116_v33  ;;  %v329_v22 = vadd.f32 0.112945676, %v328_v21  ;;  %v356_v51 = vld [vmem:[%s710_s9 + $0x18] sm:$0xff] }
  0xb6   :  { %376 = vmatpush.msrb.mxu2 %v356_v51 }
  0xb7   :  { %v137_v54 = vadd.f32 1.0, %v136_v53  ;;  %v126_v62 = vadd.f32 1.1283791, %v125_v58  ;;  %v330_v25 = vmul.f32 %v329_v22, %v312_v16 }
  0xb8   :  { %377 = vmatpush.msrb.mxu2 %v355_v52 }
  0xb9   :  { %457 = vrcp.f32 %v137_v54  ;;  %v149_v61 = vand.u32 2147483648, %v137_v54  ;;  %v147_v0 = vand.u32 2147483647, %v137_v54  ;;  %vm143_vm4 = vweird.f32 %v137_v54 }
  0xba   :  { %v127_v3 = vmul.f32 %v126_v62, %v114_v30  ;;  %v331_v29 = vadd.f32 0.4994258, %v330_v25 }
  0xbb   :  { %v150_v2 = vor.u32 1.1754944e-38, %v149_v61  ;;  %vm148_vm6 = vcmp.eq.f32.partialorder %v147_v0, 8.507059e+37 }
  0xbc   :  { %v332_v33 = vmul.f32 %v331_v29, %v312_v16 }
  0xbe   :  { %v333_v39 = vadd.f32 1.0, %v332_v33 }
  0xbf   :  { %v458_v57 = vpop.eup %457 }
  0xc0   :  { %v139_v59 = vmul.f32 %v458_v57, %v137_v54  ;;  %vm144_vm3 = vweird.f32 %v458_v57  ;;  %459 = vrcp.f32 %v333_v39  ;;  %v318_v54 = vadd.f32 0.05243302, %v317_v47 }
  0xc1   :  { %vm145_vm5 = vmor %vm143_vm4, %vm144_vm3  ;;  %vm339_vm8 = vweird.f32 %v333_v39 }
  0xc2   :  { %v140_v60 = vsub.f32 1.0, %v139_v59  ;;  %v319_v61 = vmul.f32 %v318_v54, %v312_v16 }
  0xc4   :  { %v141_v63 = vmul.f32 %v458_v57, %v140_v60  ;;  %v353_v60 = vld [vmem:[%s710_s9] sm:$0xff] }
  0xc6   :  { %v142_v1 = vadd.f32 %v458_v57, %v141_v63  ;;  %v460_v53 = vpop.eup %459 }
  0xc7   :  { %v335_v59 = vmul.f32 %v460_v53, %v333_v39  ;;  %vm340_vm9 = vweird.f32 %v460_v53 }
  0xc8   :  { %v146_v4 = vsel %vm145_vm5, %v458_v57, %v142_v1  ;;  %v354_v57 = vld [vmem:[%s710_s9 + $0x8] sm:$0xff]  ;;  %v320_v1 = vadd.f32 0.18741608, %v319_v61  ;;  %vm678_vm10 = vmor %vm339_vm8, %vm340_vm9  ;;  %vm279_vm5 = vcmask 1024   ;;  %vm401_vm8 = vcmask 0  }
  0xc9   :  { %v151_v5 = vsel %vm148_vm6, %v150_v2, %v146_v4  ;;  %378 = vmatpush.msrb.mxu2 %v354_v57  ;;  %v336_v0 = vsub.f32 1.0, %v335_v59 }
  0xca   :  { %v152_v6 = vmul.f32 %v151_v5, %v127_v3  ;;  %v321_v5 = vmul.f32 %v320_v1, %v312_v16 }
  0xcb   :  { %379 = vmatpush.msrb.mxu2 %v353_v60  ;;  %v337_v3 = vmul.f32 %v460_v53, %v336_v0 }
  0xcc   :  { %v440_v7 = vclamps-f32 %v152_v6, 1.0  ;;  %v322_v12 = vadd.f32 1.1283791, %v321_v5 }
  0xce   :  { %v155_v9 = vadd.f32 1.0, %v440_v7 }
  0xd0   :  { %v156_v10 = vmul.f32 %v155_v9, %v113_v8  ;;  %v345_v8 = vand.u32 2147483648, %v333_v39  ;;  %v338_v9 = vadd.f32 %v460_v53, %v337_v3 }
  0xd2   :  { %441 = vmatmul.msk.f32.vlgmr.msra.gmra.mxu1 %vm163_vm7, %v156_v10  ;;  %v343_v10 = vand.u32 2147483647, %v333_v39  ;;  %v346_v21 = vor.u32 1.1754944e-38, %v345_v8  ;;  %v342_v16 = vsel %vm678_vm10, %v460_v53, %v338_v9 }
  0xd4   :  { %vm344_vm12 = vcmp.eq.f32.partialorder %v343_v10, 8.507059e+37 }
  0xd5   :  { %v347_v29 = vsel %vm344_vm12, %v346_v21, %v342_v16 }
 0x14f   :  { %v184_v24 = vpop.f32.mrf.mxu1 }
 0x150   :  { %v656_v26 = vadd.f32 %v454_v23, %v184_v24  ;;  %v323_v24 = vmul.f32 %v322_v12, %v649_v14 }
 0x152   :  { %v659_v28 = vmul.f32 0.70710677, %v656_v26 }
 0x154   :  { %v189_v30 = vmul.f32 %v659_v28, %v659_v28 }
 0x156   :  { %v190_v32 = vmin.f32 %v189_v30, 16.0 }
 0x158   :  { %v191_v34 = vmul.f32 2.1237322e-06, %v190_v32  ;;  %v202_v35 = vmul.f32 3.8918573e-05, %v190_v32 }
 0x15a   :  { %v192_v37 = vadd.f32 0.00028619796, %v191_v34  ;;  %v203_v38 = vadd.f32 0.001143296, %v202_v35  ;;  %v187_v34 = vmul.f32 0.5, %v656_v26 }
 0x15b   :  { %v456_v26 = vld [vmem:[%s711_s10] ss:$0 sm:$0xff] }
 0x15c   :  { %v193_v40 = vmul.f32 %v192_v37, %v190_v32  ;;  %v204_v41 = vmul.f32 %v203_v38, %v190_v32  ;;  %v309_v38 = vmul.f32 0.5, %v646_v13 }
 0x15e   :  { %v205_v44 = vadd.f32 0.014752088, %v204_v41  ;;  %v194_v45 = vadd.f32 0.0036580483, %v193_v40 }
 0x160   :  { %v206_v46 = vmul.f32 %v205_v44, %v190_v32  ;;  %v195_v49 = vmul.f32 %v194_v45, %v190_v32 }
 0x162   :  { %v207_v48 = vadd.f32 0.112945676, %v206_v46  ;;  %v196_v56 = vadd.f32 0.05243302, %v195_v49  ;;  %v523_v46 = vmov 2.0  }
 0x164   :  { %v208_v50 = vmul.f32 %v207_v48, %v190_v32  ;;  %v197_v63 = vmul.f32 %v196_v56, %v190_v32 }
 0x166   :  { %v209_v55 = vadd.f32 0.4994258, %v208_v50  ;;  %v198_v2 = vadd.f32 0.18741608, %v197_v63 }
 0x168   :  { %v210_v58 = vmul.f32 %v209_v55, %v190_v32  ;;  %v199_v6 = vmul.f32 %v198_v2, %v190_v32  ;;  %v348_v32 = vmul.f32 %v347_v29, %v323_v24 }
 0x16a   :  { %v211_v62 = vadd.f32 1.0, %v210_v58  ;;  %v200_v18 = vadd.f32 1.1283791, %v199_v6  ;;  %v446_v36 = vclamps-f32 %v348_v32, 1.0 }
 0x16c   :  { %461 = vrcp.f32 %v211_v62  ;;  %v223_v17 = vand.u32 2147483648, %v211_v62  ;;  %v221_v20 = vand.u32 2147483647, %v211_v62  ;;  %vm217_vm13 = vweird.f32 %v211_v62 }
 0x16d   :  { %v201_v25 = vmul.f32 %v200_v18, %v659_v28  ;;  %v351_v39 = vadd.f32 1.0, %v446_v36  ;;  %v455_v28 = vld [vmem:[#allocation3] ss:$0 sm:$0xff] }
 0x16e   :  { %v224_v23 = vor.u32 1.1754944e-38, %v223_v17  ;;  %vm222_vm15 = vcmp.eq.f32.partialorder %v221_v20, 8.507059e+37 }
 0x16f   :  { %v352_v14 = vmul.f32 %v351_v39, %v309_v38 }
 0x172   :  { %v462_v4 = vpop.eup %461 }
 0x173   :  { %v213_v7 = vmul.f32 %v462_v4, %v211_v62  ;;  %vm218_vm11 = vweird.f32 %v462_v4 }
 0x174   :  { %vm219_vm14 = vmor %vm217_vm13, %vm218_vm11 }
 0x175   :  { %v214_v11 = vsub.f32 1.0, %v213_v7 }
 0x177   :  { %v215_v19 = vmul.f32 %v462_v4, %v214_v11 }
 0x179   :  { %v216_v22 = vadd.f32 %v462_v4, %v215_v19 }
 0x17b   :  { %v220_v27 = vsel %vm219_vm14, %v462_v4, %v216_v22 }
 0x17c   :  { %v225_v30 = vsel %vm222_vm15, %v224_v23, %v220_v27 }
 0x17d   :  { %v226_v31 = vmul.f32 %v225_v30, %v201_v25 }
 0x17f   :  { %v442_v33 = vclamps-f32 %v226_v31, 1.0 }
 0x181   :  { %v229_v35 = vadd.f32 1.0, %v442_v33 }
 0x183   :  { %v230_v37 = vmul.f32 %v229_v35, %v187_v34 }
 0x185   :  { %443 = vmatmul.msk.f32.vlgmr.msra.gmra.mxu2 %vm236_vm0, %v230_v37 }
 0x18d   :  { %447 = vmatmul.msk.f32.vlgmr.msrb.gmra.mxu2 %vm54_vm1, %v352_v14 }
 0x208   :  { %v257_v40 = vpop.f32.mrf.mxu2 }
 0x209   :  { %v258_v41 = vadd.f32 %v455_v28, %v257_v40 }
 0x20b   :  { %v444_v42 = vmul.f32 -1.442695, %v258_v41 }
 0x20d   :  { %463 = vpow2.f32 %v444_v42 }
 0x210   :  { %v381_v13 = vpop.f32.mrf.mxu2 }
 0x211   :  { %v382_v43 = vadd.f32 %v456_v26, %v381_v13 }
 0x213   :  { %v464_v44 = vpop.eup %463  ;;  %385 = vst.msk [vmem:[#allocation4] sm:$0x3] %vm384_vm2, %v382_v43 }
 0x214   :  { %v263_v45 = vadd.f32 1.0, %v464_v44  ;;  %415 = dma.vmem_to_hbm [thread:$0]  %s411_s23, 32, %s413_s26, [#allocation5]  }
 0x216   :  { %465 = vrcp.f32 %v263_v45  ;;  %v275_v51 = vand.u32 2147483648, %v263_v45  ;;  %v273_v53 = vand.u32 2147483647, %v263_v45  ;;  %vm269_vm3 = vweird.f32 %v263_v45 }
 0x217   :  { %467 = vrcp.f32 %v523_v46 }
 0x218   :  { %v276_v56 = vor.u32 1.1754944e-38, %v275_v51  ;;  %vm274_vm6 = vcmp.eq.f32.partialorder %v273_v53, 8.507059e+37 }
 0x21c   :  { %v466_v47 = vpop.eup %465 }
 0x21d   :  { %v265_v48 = vmul.f32 %v466_v47, %v263_v45  ;;  %v468_v49 = vpop.eup %467  ;;  %vm270_vm1 = vweird.f32 %v466_v47 }
 0x21e   :  { %v394_v54 = vmul.f32 2.0, %v468_v49  ;;  %vm271_vm4 = vmor %vm269_vm3, %vm270_vm1  ;;  %vm398_vm7 = vweird.f32 %v468_v49 }
 0x21f   :  { %v266_v50 = vsub.f32 1.0, %v265_v48 }
 0x220   :  { %v395_v58 = vsub.f32 1.0, %v394_v54 }
 0x221   :  { %v267_v52 = vmul.f32 %v466_v47, %v266_v50 }
 0x222   :  { %v396_v62 = vmul.f32 %v468_v49, %v395_v58 }
 0x223   :  { %v268_v55 = vadd.f32 %v466_v47, %v267_v52 }
 0x224   :  { %v397_v1 = vadd.f32 %v468_v49, %v396_v62 }
 0x225   :  { %v272_v57 = vsel %vm271_vm4, %v466_v47, %v268_v55 }
 0x226   :  { %v277_v59 = vsel %vm274_vm6, %v276_v56, %v272_v57  ;;  %v399_v4 = vsel %vm398_vm7, %v468_v49, %v397_v1 }
 0x227   :  { %280 = vst.msk [vmem:[%s712_s11] sm:$0x3] %vm279_vm5, %v277_v59  ;;  %v386_v60 = vsel %vm279_vm5, %v277_v59, 0.0 }
 0x228   :  { %v387_v61 = vrot.slane %v386_v60, 4 }
 0x22a   :  { %v388_v63 = vadd.f32 %v387_v61, %v386_v60 }
 0x22c   :  { %v389_v0 = vrot.slane %v388_v63, 2 }
 0x22e   :  { %v390_v2 = vadd.f32 %v389_v0, %v388_v63 }
 0x230   :  { %v391_v3 = vrot.slane %v390_v2, 1 }
 0x232   :  { %v392_v5 = vadd.f32 %v391_v3, %v390_v2 }
 0x234   :  { %v400_v6 = vmul.f32 %v399_v4, %v392_v5 }
 0x236   :  { %402 = vst.msk [vmem:[#allocation6] sm:$0x1] %vm401_vm8, %v400_v6 }
 0x237   :  { %426 = dma.vmem_to_hbm [thread:$0]  %s422_s27, 16, %s424_s30, [#allocation7]  }
 0x238   :  { %517 = dma.done.wait [#allocation5], 32  }
 0x239   :  { %518 = vsyncadd [#allocation5], 4294967264 }
 0x23a   :  { %519 = dma.done.wait [#allocation7], 16  }
 0x23b   :  { %520 = vsyncadd [#allocation7], 4294967280 }
 0x23c   :  { %437 = vsyncpa [#allocation5], 1 }
 0x23d   :  { %438 = vsyncpa [#allocation7], 1 }

</bundles_post_ra>
